<compile_context>
chip_gen: v7x
topology: tpu7x:2x2x1
jax: 0.10.0
libtpu: 0.0.40
codegen_flags: <defaults>
</compile_context>

<pallas_src>
import functools

import numpy as np
import jax
import jax.numpy as jnp
from jax.experimental import pallas as pl
from jax.experimental.pallas import tpu as pltpu

LN_EPS = 1e-5


# --------------------------------------------------------------------------
# Kernel 1: LayerNorm over the channel dim (norm1)
# --------------------------------------------------------------------------
def layernorm_kernel(x_ref, g_ref, b_ref, o_ref, *, eps):
    x = x_ref[...].astype(jnp.float32)
    mean = jnp.mean(x, axis=-1, keepdims=True)
    xc = x - mean
    var = jnp.mean(xc * xc, axis=-1, keepdims=True)   # centered, two-pass
    y = xc * jax.lax.rsqrt(var + eps) * g_ref[...] + b_ref[...]
    o_ref[...] = y.astype(o_ref.dtype)


def layernorm(x2d, gamma, beta, *, tb=128):
    t, c = x2d.shape
    tb = min(tb, t)
    assert t % tb == 0
    return pl.pallas_call(
        functools.partial(layernorm_kernel, eps=LN_EPS),
        out_shape=jax.ShapeDtypeStruct((t, c), x2d.dtype),
        grid=(t // tb,),
        in_specs=[
            pl.BlockSpec((tb, c), lambda i: (i, 0)),
            pl.BlockSpec((1, c), lambda i: (0, 0)),
            pl.BlockSpec((1, c), lambda i: (0, 0)),
        ],
        out_specs=pl.BlockSpec((tb, c), lambda i: (i, 0)),
        compiler_params=pltpu.CompilerParams(
            dimension_semantics=("parallel",)),
    )(x2d, gamma.reshape(1, c).astype(jnp.float32),
      beta.reshape(1, c).astype(jnp.float32))


# --------------------------------------------------------------------------
# Kernel 2: window multi-head self attention (QKV + attn + proj), WB windows
# per grid step.
# --------------------------------------------------------------------------
def window_attn_kernel(x_ref, mask_ref, relb_ref, qkvw_ref, qkvb_ref,
                       projw_ref, projb_ref, o_ref, *, num_heads, head_dim):
    wb, n, c = x_ref.shape
    scale = float(head_dim) ** -0.5

    x = x_ref[...].astype(jnp.float32).reshape(wb * n, c)
    # One full-width QKV matmul for all WB windows in this grid step.
    qkv = jnp.dot(x, qkvw_ref[...], preferred_element_type=jnp.float32)
    qkv = qkv + qkvb_ref[...]
    mask = mask_ref[...].astype(jnp.float32)          # (wb, n, n)

    acc = jnp.zeros((wb * n, c), dtype=jnp.float32)
    for h in range(num_heads):
        lo = h * head_dim
        q = qkv[:, lo:lo + head_dim].reshape(wb, n, head_dim) * scale
        k = qkv[:, c + lo:c + lo + head_dim].reshape(wb, n, head_dim)
        v = qkv[:, 2 * c + lo:2 * c + lo + head_dim].reshape(wb, n, head_dim)

        attn = jnp.einsum('wnd,wmd->wnm', q, k,
                          preferred_element_type=jnp.float32)
        attn = attn + relb_ref[h][None, :, :] + mask
        attn = attn - jnp.max(attn, axis=-1, keepdims=True)
        p = jnp.exp(attn)
        p = p / jnp.sum(p, axis=-1, keepdims=True)

        o_h = jnp.einsum('wnm,wmd->wnd', p, v,
                         preferred_element_type=jnp.float32)
        # Accumulate output projection per head (equivalent to concat + proj).
        acc = acc + jnp.dot(o_h.reshape(wb * n, head_dim),
                            projw_ref[lo:lo + head_dim, :],
                            preferred_element_type=jnp.float32)

    out = acc + projb_ref[...]
    o_ref[...] = out.reshape(wb, n, c).astype(o_ref.dtype)


def window_attention(x_windows, mask_exp, relb, qkv_w, qkv_b, proj_w, proj_b,
                     num_heads, wb):
    nwb, n, c = x_windows.shape
    hd = c // num_heads
    assert nwb % wb == 0
    return pl.pallas_call(
        functools.partial(window_attn_kernel,
                          num_heads=num_heads, head_dim=hd),
        out_shape=jax.ShapeDtypeStruct((nwb, n, c), x_windows.dtype),
        grid=(nwb // wb,),
        in_specs=[
            pl.BlockSpec((wb, n, c), lambda i: (i, 0, 0)),
            pl.BlockSpec((wb, n, n), lambda i: (i, 0, 0)),
            pl.BlockSpec((num_heads, n, n), lambda i: (0, 0, 0)),
            pl.BlockSpec((c, 3 * c), lambda i: (0, 0)),
            pl.BlockSpec((1, 3 * c), lambda i: (0, 0)),
            pl.BlockSpec((c, c), lambda i: (0, 0)),
            pl.BlockSpec((1, c), lambda i: (0, 0)),
        ],
        out_specs=pl.BlockSpec((wb, n, c), lambda i: (i, 0, 0)),
        compiler_params=pltpu.CompilerParams(
            dimension_semantics=("parallel",)),
    )(x_windows, mask_exp, relb,
      qkv_w.astype(jnp.float32), qkv_b.reshape(1, 3 * c).astype(jnp.float32),
      proj_w.astype(jnp.float32), proj_b.reshape(1, c).astype(jnp.float32))


# --------------------------------------------------------------------------
# Kernel 3: residual + norm2 + MLP (fc1 -> GELU -> fc2) + residual, fused.
# --------------------------------------------------------------------------
def mlp_residual_kernel(sc_ref, at_ref, g2_ref, be2_ref, w1_ref, fb1_ref,
                        w2_ref, fb2_ref, o_ref, *, eps):
    x1 = sc_ref[...].astype(jnp.float32) + at_ref[...].astype(jnp.float32)
    mean = jnp.mean(x1, axis=-1, keepdims=True)
    xc = x1 - mean
    var = jnp.mean(xc * xc, axis=-1, keepdims=True)
    h = xc * jax.lax.rsqrt(var + eps) * g2_ref[...] + be2_ref[...]
    h = jnp.dot(h, w1_ref[...], preferred_element_type=jnp.float32)
    h = h + fb1_ref[...]
    # TODO(synk): PyTorch nn.GELU default is the exact erf form; the tanh
    # approximation is used here (and in the reference) for a portable Mosaic
    # lowering.
    h = jax.nn.gelu(h, approximate=True)
    h = jnp.dot(h, w2_ref[...], preferred_element_type=jnp.float32)
    h = h + fb2_ref[...]
    o_ref[...] = (x1 + h).astype(o_ref.dtype)


def mlp_block(shortcut2d, attn2d, g2, b2, fc1_w, fc1_b, fc2_w, fc2_b, *,
              tb=256):
    t, c = shortcut2d.shape
    hid = fc1_w.shape[1]
    tb = min(tb, t)
    assert t % tb == 0
    return pl.pallas_call(
        functools.partial(mlp_residual_kernel, eps=LN_EPS),
        out_shape=jax.ShapeDtypeStruct((t, c), shortcut2d.dtype),
        grid=(t // tb,),
        in_specs=[
            pl.BlockSpec((tb, c), lambda i: (i, 0)),
            pl.BlockSpec((tb, c), lambda i: (i, 0)),
            pl.BlockSpec((1, c), lambda i: (0, 0)),
            pl.BlockSpec((1, c), lambda i: (0, 0)),
            pl.BlockSpec((c, hid), lambda i: (0, 0)),
            pl.BlockSpec((1, hid), lambda i: (0, 0)),
            pl.BlockSpec((hid, c), lambda i: (0, 0)),
            pl.BlockSpec((1, c), lambda i: (0, 0)),
        ],
        out_specs=pl.BlockSpec((tb, c), lambda i: (i, 0)),
        compiler_params=pltpu.CompilerParams(
            dimension_semantics=("parallel",)),
    )(shortcut2d, attn2d,
      g2.reshape(1, c).astype(jnp.float32), b2.reshape(1, c).astype(jnp.float32),
      fc1_w.astype(jnp.float32), fc1_b.reshape(1, hid).astype(jnp.float32),
      fc2_w.astype(jnp.float32), fc2_b.reshape(1, c).astype(jnp.float32))


# --------------------------------------------------------------------------
# Layout helpers (pure XLA plumbing, no compute)
# --------------------------------------------------------------------------
def window_partition_jax(x, ws):
    b, h, w, c = x.shape
    x = x.reshape(b, h // ws, ws, w // ws, ws, c)
    x = jnp.transpose(x, (0, 1, 3, 2, 4, 5))
    return x.reshape(-1, ws, ws, c)


def window_reverse_jax(windows, ws, h, w):
    b = windows.shape[0] // ((h // ws) * (w // ws))
    x = windows.reshape(b, h // ws, w // ws, ws, ws, -1)
    x = jnp.transpose(x, (0, 1, 3, 2, 4, 5))
    return x.reshape(b, h, w, -1)


def build_relative_position_index(ws):
    coords = np.stack(np.meshgrid(np.arange(ws), np.arange(ws), indexing="ij"))
    coords_flatten = coords.reshape(2, -1)
    rel = coords_flatten[:, :, None] - coords_flatten[:, None, :]
    rel = rel.transpose(1, 2, 0)
    rel[:, :, 0] += ws - 1
    rel[:, :, 1] += ws - 1
    rel[:, :, 0] *= 2 * ws - 1
    return rel.sum(-1).astype(np.int32)            # (ws*ws, ws*ws)


def build_attn_mask(hp, wp, ws, shift):
    img_mask = np.zeros((1, hp, wp, 1), dtype=np.float32)
    h_slices = (slice(0, -ws), slice(-ws, -shift), slice(-shift, None))
    w_slices = (slice(0, -ws), slice(-ws, -shift), slice(-shift, None))
    cnt = 0
    for hs in h_slices:
        for wsl in w_slices:
            img_mask[:, hs, wsl, :] = cnt
            cnt += 1
    m = img_mask.reshape(1, hp // ws, ws, wp // ws, ws, 1)
    m = m.transpose(0, 1, 3, 2, 4, 5).reshape(-1, ws * ws)
    attn_mask = m[:, None, :] - m[:, :, None]
    attn_mask = np.where(attn_mask != 0, -100.0, 0.0).astype(np.float32)
    return jnp.asarray(attn_mask)                  # (nW, N, N)


# --------------------------------------------------------------------------
# Full SwinTransformerBlock forward (Pallas kernels + XLA layout glue)
# --------------------------------------------------------------------------
def swin_block_forward(x, mask_matrix, params, H, W, window_size, shift_size,
                       num_heads):
    B, L, C = x.shape
    assert L == H * W
    ws = window_size
    N = ws * ws

    shortcut2d = x.reshape(B * L, C)

    # norm1 (Pallas kernel)
    xn = layernorm(shortcut2d, params["g1"], params["b1"]).reshape(B, H, W, C)

    # pad to window multiples (matches PyTorch: pad after norm1)
    pad_r = (ws - W % ws) % ws
    pad_b = (ws - H % ws) % ws
    xn = jnp.pad(xn, ((0, 0), (0, pad_b), (0, pad_r), (0, 0)))
    Hp, Wp = H + pad_b, W + pad_r
    nW = (Hp // ws) * (Wp // ws)

    if shift_size > 0:
        shifted = jnp.roll(xn, (-shift_size, -shift_size), axis=(1, 2))
        mask = mask_matrix                              # (nW, N, N)
    else:
        shifted = xn
        mask = jnp.zeros((nW, N, N), jnp.float32)

    x_windows = window_partition_jax(shifted, ws).reshape(-1, N, C)
    nwb = x_windows.shape[0]
    mask_exp = jnp.tile(mask, (B, 1, 1))                # (nwb, N, N)

    # relative position bias: parameter-only gather, done once in the wrapper
    relb = params["rel_table"][params["rel_index"].reshape(-1)]
    relb = relb.reshape(N, N, num_heads).transpose(2, 0, 1)  # (nH, N, N)

    wb = next(d for d in (8, 4, 2, 1) if nwb % d == 0)
    attn_windows = window_attention(
        x_windows, mask_exp, relb,
        params["qkv_w"], params["qkv_b"], params["proj_w"], params["proj_b"],
        num_heads, wb)

    attn_windows = attn_windows.reshape(-1, ws, ws, C)
    shifted = window_reverse_jax(attn_windows, ws, Hp, Wp)
    if shift_size > 0:
        xa = jnp.roll(shifted, (shift_size, shift_size), axis=(1, 2))
    else:
        xa = shifted
    xa = xa[:, :H, :W, :].reshape(B * L, C)

    # residual + norm2 + MLP + residual (Pallas kernel)
    out = mlp_block(shortcut2d, xa, params["g2"], params["b2"],
                    params["fc1_w"], params["fc1_b"],
                    params["fc2_w"], params["fc2_b"])
    return out.reshape(B, L, C)


# --------------------------------------------------------------------------
# Pure-JAX reference mirroring the PyTorch module
# --------------------------------------------------------------------------
def reference_forward(x, mask_matrix, params, H, W, window_size, shift_size,
                      num_heads):
    B, L, C = x.shape
    ws = window_size
    N = ws * ws
    hd = C // num_heads

    def ln(v, g, b):
        m = jnp.mean(v, -1, keepdims=True)
        var = jnp.mean((v - m) ** 2, -1, keepdims=True)
        return (v - m) * jax.lax.rsqrt(var + LN_EPS) * g + b

    shortcut = x
    xn = ln(x, params["g1"], params["b1"]).reshape(B, H, W, C)
    pad_r = (ws - W % ws) % ws
    pad_b = (ws - H % ws) % ws
    xn = jnp.pad(xn, ((0, 0), (0, pad_b), (0, pad_r), (0, 0)))
    Hp, Wp = H + pad_b, W + pad_r

    if shift_size > 0:
        shifted = jnp.roll(xn, (-shift_size, -shift_size), (1, 2))
        attn_mask = mask_matrix
    else:
        shifted = xn
        attn_mask = None

    xw = window_partition_jax(shifted, ws).reshape(-1, N, C)
    B_ = xw.shape[0]

    qkv = xw @ params["qkv_w"] + params["qkv_b"]
    qkv = qkv.reshape(B_, N, 3, num_heads, hd).transpose(2, 0, 3, 1, 4)
    q, k, v = qkv[0], qkv[1], qkv[2]
    q = q * (hd ** -0.5)
    attn = jnp.einsum("bhnd,bhmd->bhnm", q, k)
    relb = params["rel_table"][params["rel_index"].reshape(-1)]
    relb = relb.reshape(N, N, num_heads).transpose(2, 0, 1)
    attn = attn + relb[None]
    if attn_mask is not None:
        nW = attn_mask.shape[0]
        attn = attn.reshape(B_ // nW, nW, num_heads, N, N) \
            + attn_mask[None, :, None]
        attn = attn.reshape(B_, num_heads, N, N)
    attn = jax.nn.softmax(attn, axis=-1)
    out = jnp.einsum("bhnm,bhmd->bhnd", attn, v)
    out = out.transpose(0, 2, 1, 3).reshape(B_, N, C)
    out = out @ params["proj_w"] + params["proj_b"]

    out = out.reshape(-1, ws, ws, C)
    shifted = window_reverse_jax(out, ws, Hp, Wp)
    if shift_size > 0:
        xa = jnp.roll(shifted, (shift_size, shift_size), (1, 2))
    else:
        xa = shifted
    xa = xa[:, :H, :W, :].reshape(B, L, C)

    x1 = shortcut + xa
    h = ln(x1, params["g2"], params["b2"])
    h = h @ params["fc1_w"] + params["fc1_b"]
    h = jax.nn.gelu(h, approximate=True)
    h = h @ params["fc2_w"] + params["fc2_b"]
    return x1 + h


# --------------------------------------------------------------------------
if __name__ == "__main__":
    B, H, W = 2, 16, 16
    C, NUM_HEADS = 32, 4
    WINDOW_SIZE, SHIFT_SIZE = 4, 2
    MLP_HIDDEN = 4 * C
    L = H * W
    N = WINDOW_SIZE * WINDOW_SIZE

    key = jax.random.PRNGKey(0)
    keys = jax.random.split(key, 12)

    x = jax.random.normal(keys[0], (B, L, C), dtype=jnp.float32)

    params = {
        "g1": 1.0 + 0.1 * jax.random.normal(keys[1], (C,), jnp.float32),
        "b1": 0.1 * jax.random.normal(keys[2], (C,), jnp.float32),
        "qkv_w": 0.05 * jax.random.normal(keys[3], (C, 3 * C), jnp.float32),
        "qkv_b": 0.05 * jax.random.normal(keys[4], (3 * C,), jnp.float32),
        "rel_table": 0.02 * jax.random.normal(
            keys[5], ((2 * WINDOW_SIZE - 1) ** 2, NUM_HEADS), jnp.float32),
        "rel_index": jnp.asarray(build_relative_position_index(WINDOW_SIZE)),
        "proj_w": 0.05 * jax.random.normal(keys[6], (C, C), jnp.float32),
        "proj_b": 0.05 * jax.random.normal(keys[7], (C,), jnp.float32),
        "g2": 1.0 + 0.1 * jax.random.normal(keys[8], (C,), jnp.float32),
        "b2": 0.1 * jax.random.normal(keys[9], (C,), jnp.float32),
        "fc1_w": 0.05 * jax.random.normal(keys[10], (C, MLP_HIDDEN), jnp.float32),
        "fc1_b": jnp.zeros((MLP_HIDDEN,), jnp.float32),
        "fc2_w": 0.05 * jax.random.normal(keys[11], (MLP_HIDDEN, C), jnp.float32),
        "fc2_b": jnp.zeros((C,), jnp.float32),
    }

    # SW-MSA mask (built externally in PyTorch's BasicLayer, replicated here)
    mask_matrix = build_attn_mask(H, W, WINDOW_SIZE, SHIFT_SIZE)

    out = swin_block_forward(x, mask_matrix, params, H, W,
                             WINDOW_SIZE, SHIFT_SIZE, NUM_HEADS)
    out = jax.block_until_ready(out)

    ref = jax.block_until_ready(
        reference_forward(x, mask_matrix, params, H, W,
                          WINDOW_SIZE, SHIFT_SIZE, NUM_HEADS))

    assert out.shape == (B, L, C), out.shape
    max_err = float(jnp.max(jnp.abs(out - ref)))
    assert jnp.allclose(out, ref, atol=1e-3, rtol=1e-3), max_err

    print("KERNEL_OK")
</pallas_src>

<mosaic_0001>
module attributes {stable_mosaic.version = 11 : i64} {
  func.func @layernorm_kernel(%arg0: i32, %arg1: memref<128x32xf32, #tpu.memory_space<vmem>>, %arg2: memref<1x32xf32, #tpu.memory_space<vmem>>, %arg3: memref<1x32xf32, #tpu.memory_space<vmem>>, %arg4: memref<128x32xf32, #tpu.memory_space<vmem>>) attributes {dimension_semantics = [#tpu.dimension_semantics<parallel>], iteration_bounds = array<i64: 4>, scalar_prefetch = 0 : i64, scratch_operands = 0 : i64, tpu.core_type = #tpu.core_type<tc>, window_params = [{transform_indices = @transform_0, window_bounds = array<i64: 128, 32>}, {pipeline_mode = #tpu.pipeline_mode<synchronous>, transform_indices = @transform_1, window_bounds = array<i64: 1, 32>}, {pipeline_mode = #tpu.pipeline_mode<synchronous>, transform_indices = @transform_2, window_bounds = array<i64: 1, 32>}, {transform_indices = @transform_3, window_bounds = array<i64: 128, 32>}]} {
    %c0 = arith.constant 0 : index
    %c0_0 = arith.constant 0 : index
    %0 = vector.load %arg1[%c0, %c0_0] : memref<128x32xf32, #tpu.memory_space<vmem>>, vector<128x32xf32>
    %cst = arith.constant dense<0.000000e+00> : vector<128xf32>
    %1 = vector.multi_reduction <add>, %0, %cst [1] : vector<128x32xf32> to vector<128xf32>
    %2 = vector.shape_cast %1 : vector<128xf32> to vector<128x1xf32>
    %cst_1 = arith.constant 3.200000e+01 : f32
    %3 = vector.broadcast %cst_1 : f32 to vector<128x1xf32>
    %4 = arith.divf %2, %3 : vector<128x1xf32>
    %5 = vector.broadcast %4 : vector<128x1xf32> to vector<128x32xf32>
    %6 = arith.subf %0, %5 : vector<128x32xf32>
    %7 = arith.mulf %6, %6 : vector<128x32xf32>
    %cst_2 = arith.constant dense<0.000000e+00> : vector<128xf32>
    %8 = vector.multi_reduction <add>, %7, %cst_2 [1] : vector<128x32xf32> to vector<128xf32>
    %9 = vector.shape_cast %8 : vector<128xf32> to vector<128x1xf32>
    %cst_3 = arith.constant 3.200000e+01 : f32
    %10 = vector.broadcast %cst_3 : f32 to vector<128x1xf32>
    %11 = arith.divf %9, %10 : vector<128x1xf32>
    %cst_4 = arith.constant 9.99999974E-6 : f32
    %12 = vector.broadcast %cst_4 : f32 to vector<128x1xf32>
    %13 = arith.addf %11, %12 : vector<128x1xf32>
    %14 = math.rsqrt %13 : vector<128x1xf32>
    %15 = vector.broadcast %14 : vector<128x1xf32> to vector<128x32xf32>
    %16 = arith.mulf %6, %15 : vector<128x32xf32>
    %c0_5 = arith.constant 0 : index
    %c0_6 = arith.constant 0 : index
    %17 = vector.load %arg2[%c0_5, %c0_6] : memref<1x32xf32, #tpu.memory_space<vmem>>, vector<1x32xf32>
    %18 = vector.broadcast %17 : vector<1x32xf32> to vector<128x32xf32>
    %19 = arith.mulf %16, %18 : vector<128x32xf32>
    %c0_7 = arith.constant 0 : index
    %c0_8 = arith.constant 0 : index
    %20 = vector.load %arg3[%c0_7, %c0_8] : memref<1x32xf32, #tpu.memory_space<vmem>>, vector<1x32xf32>
    %21 = vector.broadcast %20 : vector<1x32xf32> to vector<128x32xf32>
    %22 = arith.addf %19, %21 : vector<128x32xf32>
    %c0_9 = arith.constant 0 : index
    %c0_10 = arith.constant 0 : index
    %23 = vector.load %arg4[%c0_9, %c0_10] : memref<128x32xf32, #tpu.memory_space<vmem>>, vector<128x32xf32>
    tpu.vector_store %arg4[%c0_9, %c0_10], %22 {strides = array<i32>} : memref<128x32xf32, #tpu.memory_space<vmem>>, vector<128x32xf32>,
    return
  }
  func.func @transform_0(%arg0: i32) -> (i32, i32) {
    %c0_i32 = arith.constant 0 : i32
    %c0_i32_0 = arith.constant 0 : i32
    return %arg0, %c0_i32 : i32, i32
  }
  func.func @transform_1(%arg0: i32) -> (i32, i32) {
    %c0_i32 = arith.constant 0 : i32
    %c0_i32_0 = arith.constant 0 : i32
    %c0_i32_1 = arith.constant 0 : i32
    return %c0_i32, %c0_i32_0 : i32, i32
  }
  func.func @transform_2(%arg0: i32) -> (i32, i32) {
    %c0_i32 = arith.constant 0 : i32
    %c0_i32_0 = arith.constant 0 : i32
    %c0_i32_1 = arith.constant 0 : i32
    return %c0_i32, %c0_i32_0 : i32, i32
  }
  func.func @transform_3(%arg0: i32) -> (i32, i32) {
    %c0_i32 = arith.constant 0 : i32
    %c0_i32_0 = arith.constant 0 : i32
    return %arg0, %c0_i32 : i32, i32
  }
}

</mosaic_0001>

<bundles_post_ra>
// kernel: tpu_custom_call.1
= control target key start
LH: loop header
LB: loop body
LE: loop exit
PB: predicated region body
PF: predicated region fallthrough
CT: control target
= control target key end

     0   :  { %s599_s12 = smov 0   ;;  %s869_s0 = inlined_call_operand.vmem [shape: f32[512,32], index: 0, kind: input, shape index: {}]   ;;  %s870_s1 = inlined_call_operand.vmem [shape: f32[1,32], index: 1, kind: input, shape index: {}]   ;;  %s871_s2 = inlined_call_operand.vmem [shape: f32[1,32], index: 2, kind: input, shape index: {}]   ;;  %s872_s3 = inlined_call_operand.vmem [shape: f32[512,32], index: 3, kind: output, shape index: {}]  }
   0x1 LB: > { %s518_s13 = sadd.s32 4294967295, %s577_s12   ;;  %p522_p0 = scmp.ge.s32.totalorder %s577_s12, 1  ;;  %s577_s12 = sphi %s599_s12, %s13_s12  }
   0x2   : > { %p138_p1 = scmp.lt.s32.totalorder %s577_s12, 5 }
   0x4   : > { %p139_p2 = pnand %p522_p0, %p138_p1 }
   0x5   : > { %s523_s14 = sshll.u32 (!%p139_p2), %s518_s13, 4  ;;  %vm190_vm0 = vcmask (!%p139_p2), 261120  }
   0x6   : > { %142 = sbr.rel (%p139_p2) target bundleno = 363 (0x16b), region = 32  ;;  %p163_p3 = scmp.lt.s32.totalorder (!%p139_p2), %s523_s14, 63 }
   0xd   : > { %s874_s14 = smov (!%p163_p3, %s523_s14), 63 }
   0xe   : > { %s524_s15 = sshll.u32 %s874_s14, 3 }
   0xf   : > { %s615_s18 = scalar_lea.vmem %s869_s0, %s524_s15  ;;  %s786_s25 = scalar_lea.vmem %s872_s3, %s524_s15 }
  0x10   : > { %v174_v0 = vld [vmem:[%s615_s18] sm:$0xff]  ;;  %v176_v1 = vld [vmem:[%s615_s18 + $0x10] sm:$0xff]  ;;  %v175_v2 = vld [vmem:[%s615_s18 + $0x8] sm:$0xff] }
  0x11   : > { %v191_v3 = vsel %vm190_vm0, %v174_v0, 0.0  ;;  %v197_v4 = vsel %vm190_vm0, %v176_v1, 0.0  ;;  %v177_v5 = vld [vmem:[%s615_s18 + $0x18] sm:$0xff]  ;;  %v194_v6 = vsel %vm190_vm0, %v175_v2, 0.0  ;;  %v178_v8 = vld [vmem:[%s615_s18 + $0x20] sm:$0xff]  ;;  %v179_v9 = vld [vmem:[%s615_s18 + $0x28] sm:$0xff] }
  0x12   : > { %192 = vadd.xlane.f32.xlu0 %v191_v3  ;;  %198 = vadd.xlane.f32.xlu1 %v197_v4  ;;  %v200_v7 = vsel %vm190_vm0, %v177_v5, 0.0  ;;  %v203_v10 = vsel %vm190_vm0, %v178_v8, 0.0  ;;  %v206_v11 = vsel %vm190_vm0, %v179_v9, 0.0  ;;  %v630_v12 = vld [vmem:[%s615_s18 + $0x30] sm:$0xff]  ;;  %v633_v13 = vld [vmem:[%s615_s18 + $0x38] sm:$0xff]  ;;  %v640_v16 = vld [vmem:[%s615_s18 + $0x40] sm:$0xff] }
  0x13   : > { %v209_v14 = vsel %vm190_vm0, %v630_v12, 0.0  ;;  %v212_v15 = vsel %vm190_vm0, %v633_v13, 0.0  ;;  %v643_v17 = vld [vmem:[%s615_s18 + $0x48] sm:$0xff]  ;;  %v215_v18 = vsel %vm190_vm0, %v640_v16, 0.0  ;;  %v650_v20 = vld [vmem:[%s615_s18 + $0x50] sm:$0xff]  ;;  %v653_v21 = vld [vmem:[%s615_s18 + $0x58] sm:$0xff] }
  0x14   : > { %v218_v19 = vsel %vm190_vm0, %v643_v17, 0.0  ;;  %v221_v22 = vsel %vm190_vm0, %v650_v20, 0.0  ;;  %v224_v23 = vsel %vm190_vm0, %v653_v21, 0.0  ;;  %v660_v24 = vld [vmem:[%s615_s18 + $0x60] sm:$0xff]  ;;  %v663_v25 = vld [vmem:[%s615_s18 + $0x68] sm:$0xff]  ;;  %v670_v28 = vld [vmem:[%s615_s18 + $0x70] sm:$0xff] }
  0x15   : > { %v227_v26 = vsel %vm190_vm0, %v660_v24, 0.0  ;;  %v230_v27 = vsel %vm190_vm0, %v663_v25, 0.0  ;;  %v673_v29 = vld [vmem:[%s615_s18 + $0x78] sm:$0xff]  ;;  %v233_v30 = vsel %vm190_vm0, %v670_v28, 0.0 }
  0x16   : > { %195 = vadd.xlane.f32.xlu0 %v194_v6  ;;  %201 = vadd.xlane.f32.xlu1 %v200_v7  ;;  %v236_v31 = vsel %vm190_vm0, %v673_v29, 0.0 }
  0x1a   : > { %204 = vadd.xlane.f32.xlu0 %v203_v10  ;;  %207 = vadd.xlane.f32.xlu1 %v206_v11 }
  0x1e   : > { %210 = vadd.xlane.f32.xlu0 %v209_v14  ;;  %213 = vadd.xlane.f32.xlu1 %v212_v15 }
  0x22   : > { %216 = vadd.xlane.f32.xlu0 %v215_v18  ;;  %219 = vadd.xlane.f32.xlu1 %v218_v19 }
  0x26   : > { %222 = vadd.xlane.f32.xlu0 %v221_v22  ;;  %225 = vadd.xlane.f32.xlu1 %v224_v23 }
  0x2a   : > { %228 = vadd.xlane.f32.xlu0 %v227_v26  ;;  %231 = vadd.xlane.f32.xlu1 %v230_v27 }
  0x2e   : > { %234 = vadd.xlane.f32.xlu0 %v233_v30  ;;  %237 = vadd.xlane.f32.xlu1 %v236_v31 }
  0x9f   : > { %v193_v32 = vpop.xlane.xlu0 %192  ;;  %v199_v33 = vpop.xlane.xlu1 %198 }
  0xa0   : > { %v240_v34 = vmul.f32 0.03125, %v193_v32  ;;  %v242_v35 = vmul.f32 0.03125, %v199_v33 }
  0xa2   : > { %v679_v36 = vsub.f32 %v174_v0, %v240_v34  ;;  %v681_v37 = vsub.f32 %v176_v1, %v242_v35 }
  0xa3   : > { %v196_v38 = vpop.xlane.xlu0 %195  ;;  %v202_v39 = vpop.xlane.xlu1 %201 }
  0xa4   : > { %v241_v40 = vmul.f32 0.03125, %v196_v38  ;;  %v243_v41 = vmul.f32 0.03125, %v202_v39  ;;  %v272_v42 = vmul.f32 %v679_v36, %v679_v36  ;;  %v274_v43 = vmul.f32 %v681_v37, %v681_v37 }
  0xa6   : > { %v687_v44 = vsub.f32 %v175_v2, %v241_v40  ;;  %v689_v45 = vsub.f32 %v177_v5, %v243_v41  ;;  %v288_v46 = vsel %vm190_vm0, %v272_v42, 0.0  ;;  %v294_v49 = vsel %vm190_vm0, %v274_v43, 0.0 }
  0xa7   : > { %289 = vadd.xlane.f32.xlu0 %v288_v46  ;;  %v205_v47 = vpop.xlane.xlu0 %204  ;;  %v208_v48 = vpop.xlane.xlu1 %207 }
  0xa8   : > { %v244_v50 = vmul.f32 0.03125, %v205_v47  ;;  %v245_v51 = vmul.f32 0.03125, %v208_v48  ;;  %v273_v52 = vmul.f32 %v687_v44, %v687_v44  ;;  %v275_v53 = vmul.f32 %v689_v45, %v689_v45 }
  0xaa   : > { %v697_v54 = vsub.f32 %v178_v8, %v244_v50  ;;  %v699_v55 = vsub.f32 %v179_v9, %v245_v51  ;;  %v291_v56 = vsel %vm190_vm0, %v273_v52, 0.0  ;;  %v297_v59 = vsel %vm190_vm0, %v275_v53, 0.0 }
  0xab   : > { %295 = vadd.xlane.f32.xlu0 %v294_v49  ;;  %292 = vadd.xlane.f32.xlu1 %v291_v56  ;;  %v211_v57 = vpop.xlane.xlu0 %210  ;;  %v214_v58 = vpop.xlane.xlu1 %213 }
  0xac   : > { %v246_v60 = vmul.f32 0.03125, %v211_v57  ;;  %v247_v61 = vmul.f32 0.03125, %v214_v58  ;;  %v276_v62 = vmul.f32 %v697_v54, %v697_v54  ;;  %v277_v63 = vmul.f32 %v699_v55, %v699_v55 }
  0xae   : > { %v708_v0 = vsub.f32 %v630_v12, %v246_v60  ;;  %v711_v1 = vsub.f32 %v633_v13, %v247_v61  ;;  %v300_v2 = vsel %vm190_vm0, %v276_v62, 0.0  ;;  %v303_v5 = vsel %vm190_vm0, %v277_v63, 0.0 }
  0xaf   : > { %298 = vadd.xlane.f32.xlu1 %v297_v59  ;;  %301 = vadd.xlane.f32.xlu0 %v300_v2  ;;  %v217_v3 = vpop.xlane.xlu0 %216  ;;  %v220_v4 = vpop.xlane.xlu1 %219 }
  0xb0   : > { %v248_v6 = vmul.f32 0.03125, %v217_v3  ;;  %v249_v7 = vmul.f32 0.03125, %v220_v4  ;;  %v278_v8 = vmul.f32 %v708_v0, %v708_v0  ;;  %v279_v9 = vmul.f32 %v711_v1, %v711_v1 }
  0xb2   : > { %v720_v10 = vsub.f32 %v640_v16, %v248_v6  ;;  %v723_v11 = vsub.f32 %v643_v17, %v249_v7  ;;  %v306_v12 = vsel %vm190_vm0, %v278_v8, 0.0  ;;  %v309_v15 = vsel %vm190_vm0, %v279_v9, 0.0 }
  0xb3   : > { %304 = vadd.xlane.f32.xlu1 %v303_v5  ;;  %307 = vadd.xlane.f32.xlu0 %v306_v12  ;;  %v223_v13 = vpop.xlane.xlu0 %222  ;;  %v226_v14 = vpop.xlane.xlu1 %225 }
  0xb4   : > { %v250_v18 = vmul.f32 0.03125, %v223_v13  ;;  %v251_v19 = vmul.f32 0.03125, %v226_v14  ;;  %v280_v22 = vmul.f32 %v720_v10, %v720_v10  ;;  %v281_v16 = vmul.f32 %v723_v11, %v723_v11  ;;  %v772_v14 = vld [vmem:[%s870_s1] ss:$0 sm:$0xff] }
  0xb6   : > { %v732_v23 = vsub.f32 %v650_v20, %v250_v18  ;;  %v735_v17 = vsub.f32 %v653_v21, %v251_v19  ;;  %v312_v26 = vsel %vm190_vm0, %v280_v22, 0.0  ;;  %v315_v31 = vsel %vm190_vm0, %v281_v16, 0.0 }
  0xb7   : > { %310 = vadd.xlane.f32.xlu1 %v309_v15  ;;  %313 = vadd.xlane.f32.xlu0 %v312_v26  ;;  %v229_v27 = vpop.xlane.xlu0 %228  ;;  %v232_v30 = vpop.xlane.xlu1 %231  ;;  %v778_v26 = vld [vmem:[%s871_s2] ss:$0 sm:$0xff] }
  0xb8   : > { %v252_v32 = vmul.f32 0.03125, %v229_v27  ;;  %v253_v33 = vmul.f32 0.03125, %v232_v30  ;;  %v282_v34 = vmul.f32 %v732_v23, %v732_v23  ;;  %v283_v20 = vmul.f32 %v735_v17, %v735_v17 }
  0xba   : > { %v744_v35 = vsub.f32 %v660_v24, %v252_v32  ;;  %v747_v21 = vsub.f32 %v663_v25, %v253_v33  ;;  %v318_v38 = vsel %vm190_vm0, %v282_v34, 0.0  ;;  %v321_v41 = vsel %vm190_vm0, %v283_v20, 0.0 }
  0xbb   : > { %316 = vadd.xlane.f32.xlu1 %v315_v31  ;;  %319 = vadd.xlane.f32.xlu0 %v318_v38  ;;  %v235_v39 = vpop.xlane.xlu0 %234  ;;  %v238_v40 = vpop.xlane.xlu1 %237 }
  0xbc   : > { %v254_v42 = vmul.f32 0.03125, %v235_v39  ;;  %v255_v43 = vmul.f32 0.03125, %v238_v40  ;;  %v284_v46 = vmul.f32 %v744_v35, %v744_v35  ;;  %v285_v24 = vmul.f32 %v747_v21, %v747_v21 }
  0xbe   : > { %v756_v47 = vsub.f32 %v670_v28, %v254_v42  ;;  %v759_v25 = vsub.f32 %v673_v29, %v255_v43  ;;  %v324_v48 = vsel %vm190_vm0, %v284_v46, 0.0  ;;  %v327_v49 = vsel %vm190_vm0, %v285_v24, 0.0 }
  0xbf   : > { %322 = vadd.xlane.f32.xlu1 %v321_v41  ;;  %325 = vadd.xlane.f32.xlu0 %v324_v48 }
  0xc0   : > { %v286_v50 = vmul.f32 %v756_v47, %v756_v47  ;;  %v287_v51 = vmul.f32 %v759_v25, %v759_v25 }
  0xc2   : > { %v330_v52 = vsel %vm190_vm0, %v286_v50, 0.0  ;;  %v333_v28 = vsel %vm190_vm0, %v287_v51, 0.0 }
  0xc3   : > { %328 = vadd.xlane.f32.xlu1 %v327_v49  ;;  %331 = vadd.xlane.f32.xlu0 %v330_v52 }
  0xc7   : > { %334 = vadd.xlane.f32.xlu1 %v333_v28 }
 0x134   : > { %v290_v29 = vpop.xlane.xlu0 %289 }
 0x135   : > { %v336_v53 = vmul.f32 0.03125, %v290_v29 }
 0x137   : > { %v352_v56 = vadd.f32 1e-05, %v336_v53 }
 0x138   : > { %v293_v57 = vpop.xlane.xlu1 %292  ;;  %v296_v58 = vpop.xlane.xlu0 %295 }
 0x139   : > { %539 = vrsqrt.f32 %v352_v56  ;;  %v337_v59 = vmul.f32 0.03125, %v293_v57  ;;  %v338_v60 = vmul.f32 0.03125, %v296_v58 }
 0x13b   : > { %v353_v61 = vadd.f32 1e-05, %v337_v59  ;;  %v354_v62 = vadd.f32 1e-05, %v338_v60 }
 0x13c   : > { %v299_v63 = vpop.xlane.xlu1 %298  ;;  %v302_v2 = vpop.xlane.xlu0 %301 }
 0x13d   : > { %541 = vrsqrt.f32 %v353_v61  ;;  %v339_v3 = vmul.f32 0.03125, %v299_v63  ;;  %v340_v4 = vmul.f32 0.03125, %v302_v2 }
 0x13e   : > { %543 = vrsqrt.f32 %v354_v62 }
 0x13f   : > { %v355_v5 = vadd.f32 1e-05, %v339_v3  ;;  %v356_v6 = vadd.f32 1e-05, %v340_v4 }
 0x140   : > { %v305_v7 = vpop.xlane.xlu1 %304  ;;  %v308_v8 = vpop.xlane.xlu0 %307 }
 0x141   : > { %545 = vrsqrt.f32 %v355_v5  ;;  %v341_v9 = vmul.f32 0.03125, %v305_v7  ;;  %v342_v12 = vmul.f32 0.03125, %v308_v8 }
 0x142   : > { %547 = vrsqrt.f32 %v356_v6 }
 0x143   : > { %v540_v13 = vpop.eup %539  ;;  %v357_v15 = vadd.f32 1e-05, %v341_v9  ;;  %v358_v18 = vadd.f32 1e-05, %v342_v12 }
 0x144   : > { %v384_v19 = vmul.f32 %v540_v13, %v679_v36  ;;  %v311_v22 = vpop.xlane.xlu1 %310  ;;  %v314_v16 = vpop.xlane.xlu0 %313 }
 0x145   : > { %549 = vrsqrt.f32 %v357_v15  ;;  %v343_v27 = vmul.f32 0.03125, %v311_v22  ;;  %v344_v30 = vmul.f32 0.03125, %v314_v16 }
 0x146   : > { %v407_v31 = vmul.f32 %v772_v14, %v384_v19  ;;  %551 = vrsqrt.f32 %v358_v18 }
 0x147   : > { %v542_v32 = vpop.eup %541  ;;  %v359_v36 = vadd.f32 1e-05, %v343_v27  ;;  %v360_v33 = vadd.f32 1e-05, %v344_v30 }
 0x148   : > { %v544_v34 = vpop.eup %543  ;;  %v430_v20 = vadd.f32 %v778_v26, %v407_v31  ;;  %v385_v38 = vmul.f32 %v542_v32, %v687_v44  ;;  %v317_v39 = vpop.xlane.xlu1 %316 }
 0x149   : > { %v320_v40 = vpop.xlane.xlu0 %319  ;;  %v386_v41 = vmul.f32 %v544_v34, %v681_v37  ;;  %553 = vrsqrt.f32 %v359_v36  ;;  %v345_v42 = vmul.f32 0.03125, %v317_v39 }
 0x14a   : > { %v346_v43 = vmul.f32 0.03125, %v320_v40  ;;  %446 = vst.msk [vmem:[%s786_s25] sm:$0xff] %vm190_vm0, %v430_v20  ;;  %v408_v46 = vmul.f32 %v772_v14, %v385_v38  ;;  %555 = vrsqrt.f32 %v360_v33 }
 0x14b   : > { %v546_v24 = vpop.eup %545  ;;  %v409_v48 = vmul.f32 %v772_v14, %v386_v41  ;;  %v361_v49 = vadd.f32 1e-05, %v345_v42 }
 0x14c   : > { %v362_v50 = vadd.f32 1e-05, %v346_v43  ;;  %v548_v44 = vpop.eup %547  ;;  %v431_v51 = vadd.f32 %v778_v26, %v408_v46  ;;  %v387_v37 = vmul.f32 %v546_v24, %v689_v45  ;;  %v323_v52 = vpop.xlane.xlu1 %322 }
 0x14d   : > { %v326_v28 = vpop.xlane.xlu0 %325  ;;  %v432_v29 = vadd.f32 %v778_v26, %v409_v48  ;;  %v388_v53 = vmul.f32 %v548_v44, %v697_v54  ;;  %557 = vrsqrt.f32 %v361_v49  ;;  %v347_v56 = vmul.f32 0.03125, %v323_v52 }
 0x14e   : > { %447 = vst.msk [vmem:[%s786_s25 + $0x8] sm:$0xff] %vm190_vm0, %v431_v51  ;;  %v410_v57 = vmul.f32 %v772_v14, %v387_v37  ;;  %559 = vrsqrt.f32 %v362_v50  ;;  %v348_v58 = vmul.f32 0.03125, %v326_v28 }
 0x14f   : > { %v550_v59 = vpop.eup %549  ;;  %448 = vst.msk [vmem:[%s786_s25 + $0x10] sm:$0xff] %vm190_vm0, %v432_v29  ;;  %v411_v45 = vmul.f32 %v772_v14, %v388_v53  ;;  %v363_v60 = vadd.f32 1e-05, %v347_v56 }
 0x150   : > { %v552_v61 = vpop.eup %551  ;;  %v433_v62 = vadd.f32 %v778_v26, %v410_v57  ;;  %v389_v54 = vmul.f32 %v550_v59, %v699_v55  ;;  %v364_v63 = vadd.f32 1e-05, %v348_v58  ;;  %v329_v2 = vpop.xlane.xlu1 %328 }
 0x151   : > { %v332_v3 = vpop.xlane.xlu0 %331  ;;  %v434_v4 = vadd.f32 %v778_v26, %v411_v45  ;;  %v390_v5 = vmul.f32 %v552_v61, %v708_v0  ;;  %561 = vrsqrt.f32 %v363_v60  ;;  %v349_v6 = vmul.f32 0.03125, %v329_v2 }
 0x152   : > { %449 = vst.msk [vmem:[%s786_s25 + $0x18] sm:$0xff] %vm190_vm0, %v433_v62  ;;  %v412_v7 = vmul.f32 %v772_v14, %v389_v54  ;;  %563 = vrsqrt.f32 %v364_v63  ;;  %v350_v8 = vmul.f32 0.03125, %v332_v3 }
 0x153   : > { %v554_v9 = vpop.eup %553  ;;  %450 = vst.msk [vmem:[%s786_s25 + $0x20] sm:$0xff] %vm190_vm0, %v434_v4  ;;  %v413_v55 = vmul.f32 %v772_v14, %v390_v5  ;;  %v365_v12 = vadd.f32 1e-05, %v349_v6 }
 0x154   : > { %v556_v13 = vpop.eup %555  ;;  %v435_v15 = vadd.f32 %v778_v26, %v412_v7  ;;  %v391_v0 = vmul.f32 %v554_v9, %v711_v1  ;;  %v366_v18 = vadd.f32 1e-05, %v350_v8  ;;  %v335_v19 = vpop.xlane.xlu1 %334 }
 0x155   : > { %v436_v22 = vadd.f32 %v778_v26, %v413_v55  ;;  %v392_v16 = vmul.f32 %v556_v13, %v720_v10  ;;  %565 = vrsqrt.f32 %v365_v12  ;;  %v351_v27 = vmul.f32 0.03125, %v335_v19 }
 0x156   : > { %451 = vst.msk [vmem:[%s786_s25 + $0x28] sm:$0xff] %vm190_vm0, %v435_v15  ;;  %v414_v30 = vmul.f32 %v772_v14, %v391_v0  ;;  %567 = vrsqrt.f32 %v366_v18 }
 0x157   : > { %v558_v31 = vpop.eup %557  ;;  %452 = vst.msk [vmem:[%s786_s25 + $0x30] sm:$0xff] %vm190_vm0, %v436_v22  ;;  %v415_v1 = vmul.f32 %v772_v14, %v392_v16  ;;  %v367_v32 = vadd.f32 1e-05, %v351_v27 }
 0x158   : > { %v560_v36 = vpop.eup %559  ;;  %v437_v33 = vadd.f32 %v778_v26, %v414_v30  ;;  %v393_v10 = vmul.f32 %v558_v31, %v723_v11 }
 0x159   : > { %v438_v34 = vadd.f32 %v778_v26, %v415_v1  ;;  %v394_v20 = vmul.f32 %v560_v36, %v732_v23  ;;  %569 = vrsqrt.f32 %v367_v32 }
 0x15a   : > { %453 = vst.msk [vmem:[%s786_s25 + $0x38] sm:$0xff] %vm190_vm0, %v437_v33  ;;  %v416_v38 = vmul.f32 %v772_v14, %v393_v10 }
 0x15b   : > { %v562_v39 = vpop.eup %561  ;;  %454 = vst.msk [vmem:[%s786_s25 + $0x40] sm:$0xff] %vm190_vm0, %v438_v34  ;;  %v417_v40 = vmul.f32 %v772_v14, %v394_v20 }
 0x15c   : > { %v564_v41 = vpop.eup %563  ;;  %v439_v42 = vadd.f32 %v778_v26, %v416_v38  ;;  %v395_v11 = vmul.f32 %v562_v39, %v735_v17 }
 0x15d   : > { %v440_v43 = vadd.f32 %v778_v26, %v417_v40  ;;  %v396_v23 = vmul.f32 %v564_v41, %v744_v35 }
 0x15e   : > { %455 = vst.msk [vmem:[%s786_s25 + $0x48] sm:$0xff] %vm190_vm0, %v439_v42  ;;  %v418_v46 = vmul.f32 %v772_v14, %v395_v11 }
 0x15f   : > { %v566_v24 = vpop.eup %565  ;;  %456 = vst.msk [vmem:[%s786_s25 + $0x50] sm:$0xff] %vm190_vm0, %v440_v43  ;;  %v419_v48 = vmul.f32 %v772_v14, %v396_v23 }
 0x160   : > { %v568_v49 = vpop.eup %567  ;;  %v441_v50 = vadd.f32 %v778_v26, %v418_v46  ;;  %v397_v17 = vmul.f32 %v566_v24, %v747_v21 }
 0x161   : > { %v442_v44 = vadd.f32 %v778_v26, %v419_v48  ;;  %v398_v35 = vmul.f32 %v568_v49, %v756_v47 }
 0x162   : > { %457 = vst.msk [vmem:[%s786_s25 + $0x58] sm:$0xff] %vm190_vm0, %v441_v50  ;;  %v420_v51 = vmul.f32 %v772_v14, %v397_v17 }
 0x163   : > { %v570_v37 = vpop.eup %569  ;;  %458 = vst.msk [vmem:[%s786_s25 + $0x60] sm:$0xff] %vm190_vm0, %v442_v44  ;;  %v421_v52 = vmul.f32 %v772_v14, %v398_v35 }
 0x164   : > { %v443_v28 = vadd.f32 %v778_v26, %v420_v51  ;;  %v399_v29 = vmul.f32 %v570_v37, %v759_v25 }
 0x165   : > { %v444_v53 = vadd.f32 %v778_v26, %v421_v52 }
 0x166   : > { %459 = vst.msk [vmem:[%s786_s25 + $0x68] sm:$0xff] %vm190_vm0, %v443_v28  ;;  %v422_v21 = vmul.f32 %v772_v14, %v399_v29 }
 0x167   : > { %460 = vst.msk [vmem:[%s786_s25 + $0x70] sm:$0xff] %vm190_vm0, %v444_v53 }
 0x168   : > { %v445_v47 = vadd.f32 %v778_v26, %v422_v21 }
 0x16a   : > { %461 = vst.msk [vmem:[%s786_s25 + $0x78] sm:$0xff] %vm190_vm0, %v445_v47 }
 0x16b PF: > { %s13_s12 = sadd.s32 1, %s577_s12  }
 0x16c   : > { %p10_p4 = scmp.ge.s32.totalorder %s13_s12, 6  }
 0x16e   :  { %12 = sbr.rel (!%p10_p4) target bundleno = 1 (0x1), region = 62 }

</bundles_post_ra>
